<compile_context>
chip_gen: v7x
topology: tpu7x:2x2x1
jax: 0.10.0
libtpu: 0.0.40
codegen_flags: <defaults>
</compile_context>

<pallas_src>
import functools
from typing import NamedTuple

import jax
import jax.numpy as jnp
from jax.experimental import pallas as pl
from jax.experimental.pallas import tpu as pltpu


# ----------------------------------------------------------------------------
# small helpers
# ----------------------------------------------------------------------------
def _round_up(x, m):
    return (x + m - 1) // m * m


def _pad2(a, rows, cols):
    return jnp.pad(a, ((0, rows - a.shape[0]), (0, cols - a.shape[1])))


def _vmem_bytes(rows, cols, itemsize):
    # Honest VMEM estimate: arrays are tiled to (8 sublanes, 128 lanes).
    return _round_up(max(int(rows), 1), 8) * _round_up(max(int(cols), 1), 128) * itemsize


def _vmem_cap_bytes():
    """Generation-aware VMEM budget (leave headroom below physical capacity)."""
    try:
        cap = int(pltpu.get_tpu_info().vmem_capacity_bytes)
    except Exception:
        cap = 64 << 20  # conservative: v7x has 64 MiB / TensorCore
    # ~16 MiB headroom; ~48 MiB effective on v7x, ~100 MiB on v5e/v6e.
    return min(max(cap - (16 << 20), cap // 2), 100 << 20)


def _num_tensorcores():
    """Best-effort TensorCore-per-chip count (perf hint only, not correctness)."""
    try:
        kind = jax.devices()[0].device_kind.lower()
    except Exception:
        return 1
    # v7x (and v4/v5p megacore) expose 2 TensorCores; v5e/v6e are single-TC.
    return 2 if any(tag in kind for tag in ("v7", "v4", "v5p")) else 1


class LFAIMeta(NamedTuple):
    hidden: int
    vocab: int
    table_rows: int
    H_pad: int
    V_pad: int
    tbl_pad: int
    tile_n: int


# ----------------------------------------------------------------------------
# one-time parameter packing (hoisted out of the per-call forward)
# ----------------------------------------------------------------------------
def pack_params(params, *, tile_n=None):
    """Pad + cast weights once.  Kernel compute contract: bf16 weights, f32 acc."""
    emb = jnp.asarray(params["emb"])
    tbl, H = emb.shape
    V = params["w4"].shape[1]

    H_pad = _round_up(H, 128)
    V128 = _round_up(V, 128)
    if tile_n is None:
        # Single output tile for modest vocabularies; otherwise 1024-wide
        # (multiple of 256 -> fills the 2x256 MXU passes on v6e/v7x).
        tile_n_eff = V128 if V128 <= 2048 else 1024
    else:
        tile_n_eff = _round_up(int(tile_n), 128)
    V_pad = _round_up(V128, tile_n_eff)
    tbl_pad = _round_up(tbl, 16)  # bf16 native sublane pack is (16, 128)

    packed = dict(
        emb=_pad2(emb, tbl_pad, H_pad).astype(jnp.bfloat16),
        w1=_pad2(params["w1"], H_pad, H_pad).astype(jnp.bfloat16),
        w2=_pad2(params["w2"], H_pad, H_pad).astype(jnp.bfloat16),
        w3=_pad2(params["w3"], H_pad, H_pad).astype(jnp.bfloat16),
        w4=_pad2(params["w4"], H_pad, V_pad).astype(jnp.bfloat16),
        b1=_pad2(params["b1"], 1, H_pad).astype(jnp.float32),
        b2=_pad2(params["b2"], 1, H_pad).astype(jnp.float32),
        b3=_pad2(params["b3"], 1, H_pad).astype(jnp.float32),
        b4=_pad2(params["b4"], 1, V_pad).astype(jnp.float32),
    )
    meta = LFAIMeta(hidden=H, vocab=V, table_rows=tbl, H_pad=H_pad, V_pad=V_pad,
                    tbl_pad=tbl_pad, tile_n=tile_n_eff)
    return packed, meta


# ----------------------------------------------------------------------------
# kernels
# ----------------------------------------------------------------------------
def _dense(h, w_ref, b_ref, *, relu):
    acc = jnp.dot(h, w_ref[...], preferred_element_type=jnp.float32) + b_ref[...]
    if relu:
        acc = jnp.maximum(acc, 0.0)
    return acc


def _hidden_stack(h0_bf16, w1_ref, b1_ref, w2_ref, b2_ref, w3_ref, b3_ref):
    h = _dense(h0_bf16, w1_ref, b1_ref, relu=True).astype(jnp.bfloat16)
    h = _dense(h, w2_ref, b2_ref, relu=True).astype(jnp.bfloat16)
    h = _dense(h, w3_ref, b3_ref, relu=True).astype(jnp.bfloat16)
    return h


def _lfai_kernel_onehot(ids_ref, emb_ref, w1_ref, b1_ref, w2_ref, b2_ref,
                        w3_ref, b3_ref, w4_ref, b4_ref, o_ref, h_ref):
    """Small-table path: in-kernel one-hot MXU gather + fused 4-layer MLP.

    Grid = (row tiles i, vocab tiles j); layers 1-3 run once per row tile
    (j == 0) into the persistent bf16 scratch `h_ref`, the last Linear streams
    a (H_pad, tile_n) weight block per j.
    """
    j = pl.program_id(1)

    @pl.when(j == 0)
    def _():
        ids = ids_ref[...]                                      # (tile_m, 1) int32
        tbl = emb_ref.shape[0]
        onehot = (jax.lax.broadcasted_iota(jnp.int32, (ids.shape[0], tbl), 1)
                  == ids).astype(jnp.bfloat16)
        # Exact row selection on the MXU; table is only block_size+vocab rows.
        h0 = jnp.dot(onehot, emb_ref[...],
                     preferred_element_type=jnp.float32).astype(jnp.bfloat16)
        # TODO(synk): training-mode dropout (p=0.1) not implemented; eval mode
        # (identity) matches the reference semantics used here.
        h_ref[...] = _hidden_stack(h0, w1_ref, b1_ref, w2_ref, b2_ref, w3_ref, b3_ref)

    out = jnp.dot(h_ref[...], w4_ref[...],
                  preferred_element_type=jnp.float32) + b4_ref[...]
    o_ref[...] = out.astype(o_ref.dtype)


def _lfai_kernel_pregathered(x_ref, w1_ref, b1_ref, w2_ref, b2_ref,
                             w3_ref, b3_ref, w4_ref, b4_ref, o_ref, h_ref):
    """Large-table path: embedding rows gathered by XLA, streamed as bf16 tiles."""
    j = pl.program_id(1)

    @pl.when(j == 0)
    def _():
        h_ref[...] = _hidden_stack(x_ref[...], w1_ref, b1_ref, w2_ref, b2_ref,
                                   w3_ref, b3_ref)

    out = jnp.dot(h_ref[...], w4_ref[...],
                  preferred_element_type=jnp.float32) + b4_ref[...]
    o_ref[...] = out.astype(o_ref.dtype)


# ----------------------------------------------------------------------------
# forward
# ----------------------------------------------------------------------------
def _xla_forward(x_ids, packed, meta, out_dtype):
    B, T = x_ids.shape
    ids = x_ids.reshape(-1).astype(jnp.int32)
    x = jnp.take(packed["emb"].astype(jnp.float32), ids, axis=0)
    h = jnp.maximum(x @ packed["w1"].astype(jnp.float32) + packed["b1"], 0.0)
    h = jnp.maximum(h @ packed["w2"].astype(jnp.float32) + packed["b2"], 0.0)
    h = jnp.maximum(h @ packed["w3"].astype(jnp.float32) + packed["b3"], 0.0)
    out = h @ packed["w4"].astype(jnp.float32) + packed["b4"]
    return out[:, :meta.vocab].reshape(B, T, meta.vocab).astype(out_dtype)


@functools.partial(jax.jit,
                   static_argnames=("meta", "tile_m", "out_dtype", "gather",
                                    "use_pallas"))
def lfai_linear_forward(x_ids, packed, meta, *, tile_m=None,
                        out_dtype=jnp.float32, gather="auto", use_pallas=None):
    """LFAI_Linear forward (eval mode: dropout is identity).

    x_ids:   (B, T) int token ids (may index the full block_size+vocab table).
    packed:  output of pack_params (bf16 weights, f32 biases, padded).
    meta:    LFAIMeta from pack_params (static).
    out_dtype: f32 by default; bf16 recommended on v5e (halves logit writeback).
    gather:  "auto" | "onehot" | "xla".
    """
    B, T = x_ids.shape
    M = B * T
    H, V = meta.hidden, meta.vocab
    H_pad, V_pad = meta.H_pad, meta.V_pad
    tile_n, tbl_pad = meta.tile_n, meta.tbl_pad

    if use_pallas is None:
        # Tiny problems: the pallas_call fixed cost dominates -> plain XLA.
        use_pallas = M >= 128 and max(H, V) >= 64
    if not use_pallas:
        return _xla_forward(x_ids, packed, meta, out_dtype)

    if gather == "auto":
        gather = "onehot" if tbl_pad <= 1024 else "xla"
    use_onehot = gather == "onehot"

    # ---- tile selection (generation-aware) ---------------------------------
    grid_n = V_pad // tile_n
    n_cores = _num_tensorcores()
    vmem_cap = _vmem_cap_bytes()
    out_isz = jnp.dtype(out_dtype).itemsize

    w4_bufs = 1 if grid_n == 1 else 2          # streamed over j only if tiled
    resident = (3 * _vmem_bytes(H_pad, H_pad, 2)          # w1..w3 bf16 (1 buffer)
                + 3 * _vmem_bytes(1, H_pad, 4)            # b1..b3 f32
                + w4_bufs * (_vmem_bytes(H_pad, tile_n, 2)
                             + _vmem_bytes(1, tile_n, 4)))
    if use_onehot:
        resident += _vmem_bytes(tbl_pad, H_pad, 2)

    def vmem_needed(tm):
        ins = 2 * (_vmem_bytes(tm, 1, 4) if use_onehot else _vmem_bytes(tm, H_pad, 2))
        outs = 2 * _vmem_bytes(tm, tile_n, out_isz)
        scr = _vmem_bytes(tm, H_pad, 2)                    # persistent h scratch
        tmp = 3 * _vmem_bytes(tm, max(H_pad, tile_n), 4)   # f32 compute temps
        if use_onehot:
            tmp += _vmem_bytes(tm, tbl_pad, 2)             # one-hot temp
        return resident + ins + outs + scr + tmp

    # Big row tiles amortize the ~0.35us per-grid-step overhead.  Single-TC
    # chips (v5e/v6e) get a larger default; megacore chips keep headroom.
    tm = tile_m if tile_m is not None else (256 if n_cores > 1 else 512)
    tm = max(8, _round_up(min(int(tm), M), 8))
    while tm > 8 and vmem_needed(tm) > int(0.85 * vmem_cap):
        tm = max(8, _round_up(tm // 2, 8))
    if n_cores > 1 and tile_m is None:
        # Megacore only: keep >= n_cores row tiles so the "parallel" axis shards.
        while tm > 8 and -(-M // tm) < n_cores:
            tm = max(8, _round_up(tm // 2, 8))
    # Round grid_m up to a multiple of the core count (avoids tail imbalance on
    # v7x; on single-TC chips this is just cdiv).
    M_pad = _round_up(M, tm * n_cores)
    grid_m = M_pad // tm
    vmem_limit = int(min(max(2 * vmem_needed(tm), 32 << 20), vmem_cap))

    # ---- block specs --------------------------------------------------------
    def _resident(shape):
        # Grid-invariant operand: one pipeline buffer (default double buffering
        # would double the resident-weight VMEM footprint for nothing).
        return pl.BlockSpec(shape, lambda i, j: (0, 0), pipeline_mode=pl.Buffered(1))

    weight_specs = [
        _resident((H_pad, H_pad)), _resident((1, H_pad)),   # layer 1
        _resident((H_pad, H_pad)), _resident((1, H_pad)),   # layer 2
        _resident((H_pad, H_pad)), _resident((1, H_pad)),   # layer 3
    ]
    if grid_n == 1:
        w4_spec = _resident((H_pad, tile_n))
        b4_spec = _resident((1, tile_n))
    else:
        w4_spec = pl.BlockSpec((H_pad, tile_n), lambda i, j: (0, j))
        b4_spec = pl.BlockSpec((1, tile_n), lambda i, j: (0, j))

    ids = jnp.pad(x_ids.reshape(-1).astype(jnp.int32), (0, M_pad - M))

    if use_onehot:
        kernel = _lfai_kernel_onehot
        # ids streamed as (tile_m, 1) blocks; with j innermost they are fetched
        # only when i changes.  (A VMEM-resident (M,1) column would lane-pad
        # 128x, so streaming is the cheaper option here.)
        lead_inputs = (ids[:, None], packed["emb"])
        lead_specs = [pl.BlockSpec((tm, 1), lambda i, j: (i, 0)),
                      _resident((tbl_pad, H_pad))]
    else:
        # Large tables: gather rows once with XLA, stream bf16 activations.
        # TODO(synk): an in-kernel DMA row gather (scalar-prefetched ids +
        # make_async_copy) would avoid this (M, H) HBM round trip.
        x = jnp.take(packed["emb"], ids, axis=0)            # (M_pad, H_pad) bf16
        kernel = _lfai_kernel_pregathered
        lead_inputs = (x,)
        lead_specs = [pl.BlockSpec((tm, H_pad), lambda i, j: (i, 0))]

    out = pl.pallas_call(
        kernel,
        out_shape=jax.ShapeDtypeStruct((M_pad, V_pad), out_dtype),
        grid_spec=pltpu.PrefetchScalarGridSpec(
            num_scalar_prefetch=0,
            grid=(grid_m, grid_n),
            in_specs=lead_specs + weight_specs + [w4_spec, b4_spec],
            out_specs=pl.BlockSpec((tm, tile_n), lambda i, j: (i, j)),
            scratch_shapes=[pltpu.VMEM((tm, H_pad), jnp.bfloat16)],
        ),
        compiler_params=pltpu.CompilerParams(
            dimension_semantics=("parallel", "arbitrary"),
            vmem_limit_bytes=vmem_limit),
    )(*lead_inputs, packed["w1"], packed["b1"], packed["w2"], packed["b2"],
      packed["w3"], packed["b3"], packed["w4"], packed["b4"])

    return out[:M, :V].reshape(B, T, V)


# ----------------------------------------------------------------------------
# synthetic params + pure-JAX reference
# ----------------------------------------------------------------------------
def init_params(key, vocab_size, block_size, hidden_size):
    """Deterministic synthetic parameters matching the PyTorch module shapes."""
    ks = jax.random.split(key, 9)
    # embedding.weight.data = randn(block_size + vocab_size, hidden_size)
    emb = jax.random.normal(ks[0], (block_size + vocab_size, hidden_size),
                            jnp.float32)

    def linear(kw, kb, fan_in, fan_out):
        # PyTorch Linear stores W as (out, in); store transposed (in, out)
        # so the kernel computes x @ W + b.
        bound = 1.0 / jnp.sqrt(fan_in)
        w = jax.random.uniform(kw, (fan_in, fan_out), jnp.float32, -bound, bound)
        b = jax.random.uniform(kb, (1, fan_out), jnp.float32, -bound, bound)
        return w, b

    w1, b1 = linear(ks[1], ks[2], hidden_size, hidden_size)
    w2, b2 = linear(ks[3], ks[4], hidden_size, hidden_size)
    w3, b3 = linear(ks[5], ks[6], hidden_size, hidden_size)
    w4, b4 = linear(ks[7], ks[8], hidden_size, vocab_size)

    return dict(emb=emb, w1=w1, b1=b1, w2=w2, b2=b2,
                w3=w3, b3=b3, w4=w4, b4=b4)


def _reference(x_ids, params):
    x = jnp.take(params["emb"], x_ids.reshape(-1), axis=0)
    h = jnp.maximum(x @ params["w1"] + params["b1"], 0.0)
    h = jnp.maximum(h @ params["w2"] + params["b2"], 0.0)
    h = jnp.maximum(h @ params["w3"] + params["b3"], 0.0)
    out = h @ params["w4"] + params["b4"]
    B, T = x_ids.shape
    return out.reshape(B, T, -1)


if __name__ == "__main__":
    key = jax.random.PRNGKey(0)
    k1, k2, k3, k4 = jax.random.split(key, 4)

    # ---- Test 1: module-sized toy config (single vocab tile) ---------------
    vocab_size, block_size, hidden_size = 32, 8, 32
    batch, seq = 2, block_size

    params = init_params(k1, vocab_size, block_size, hidden_size)
    packed, meta = pack_params(params)
    x_ids = jax.random.randint(k2, (batch, seq), 0,
                               block_size + vocab_size, dtype=jnp.int32)
    ref = _reference(x_ids, params)

    out = jax.block_until_ready(
        lfai_linear_forward(x_ids, packed, meta, use_pallas=True))
    assert out.shape == (batch, seq, vocab_size), out.shape
    err = float(jnp.max(jnp.abs(out - ref)))
    assert err < 5e-2, err

    # Same config through the pre-gathered ("xla" gather) kernel variant.
    out_xla = jax.block_until_ready(
        lfai_linear_forward(x_ids, packed, meta, use_pallas=True, gather="xla"))
    err = float(jnp.max(jnp.abs(out_xla - ref)))
    assert err < 5e-2, err

    # Auto path: small problem -> XLA fallback on the packed (bf16) weights.
    out_auto = jax.block_until_ready(lfai_linear_forward(x_ids, packed, meta))
    err = float(jnp.max(jnp.abs(out_auto - ref)))
    assert err < 5e-2, err

    # ---- Test 2: exercise the tiled path (grid_m > 1, vocab tiles > 1) -----
    vocab2, block2, hidden2 = 300, 8, 96
    batch2, seq2 = 4, 64
    params2 = init_params(k3, vocab2, block2, hidden2)
    packed2, meta2 = pack_params(params2, tile_n=128)   # force vocab tiling
    x2 = jax.random.randint(k4, (batch2, seq2), 0,
                            block2 + vocab2, dtype=jnp.int32)
    ref2 = _reference(x2, params2)

    out2 = jax.block_until_ready(
        lfai_linear_forward(x2, packed2, meta2, use_pallas=True, tile_m=64))
    assert out2.shape == (batch2, seq2, vocab2), out2.shape
    err2 = float(jnp.max(jnp.abs(out2 - ref2)))
    assert err2 < 1e-1, err2

    print("KERNEL_OK")
</pallas_src>

<mosaic_0001>
module attributes {stable_mosaic.version = 11 : i64} {
  func.func @_lfai_kernel_onehot(%arg0: i32, %arg1: i32, %arg2: memref<16x1xi32, #tpu.memory_space<vmem>>, %arg3: memref<48x128xbf16, #tpu.memory_space<vmem>>, %arg4: memref<128x128xbf16, #tpu.memory_space<vmem>>, %arg5: memref<1x128xf32, #tpu.memory_space<vmem>>, %arg6: memref<128x128xbf16, #tpu.memory_space<vmem>>, %arg7: memref<1x128xf32, #tpu.memory_space<vmem>>, %arg8: memref<128x128xbf16, #tpu.memory_space<vmem>>, %arg9: memref<1x128xf32, #tpu.memory_space<vmem>>, %arg10: memref<128x128xbf16, #tpu.memory_space<vmem>>, %arg11: memref<1x128xf32, #tpu.memory_space<vmem>>, %arg12: memref<16x128xf32, #tpu.memory_space<vmem>>, %arg13: memref<16x128xbf16, #tpu.memory_space<vmem>>) attributes {dimension_semantics = [#tpu.dimension_semantics<parallel>, #tpu.dimension_semantics<arbitrary>], iteration_bounds = array<i64: 1, 1>, scalar_prefetch = 0 : i64, scratch_operands = 1 : i64, tpu.core_type = #tpu.core_type<tc>, window_params = [{transform_indices = @transform_0, window_bounds = array<i64: 16, 1>}, {pipeline_mode = #tpu.pipeline_mode<synchronous>, transform_indices = @transform_1, window_bounds = array<i64: 48, 128>}, {pipeline_mode = #tpu.pipeline_mode<synchronous>, transform_indices = @transform_2, window_bounds = array<i64: 128, 128>}, {pipeline_mode = #tpu.pipeline_mode<synchronous>, transform_indices = @transform_3, window_bounds = array<i64: 1, 128>}, {pipeline_mode = #tpu.pipeline_mode<synchronous>, transform_indices = @transform_4, window_bounds = array<i64: 128, 128>}, {pipeline_mode = #tpu.pipeline_mode<synchronous>, transform_indices = @transform_5, window_bounds = array<i64: 1, 128>}, {pipeline_mode = #tpu.pipeline_mode<synchronous>, transform_indices = @transform_6, window_bounds = array<i64: 128, 128>}, {pipeline_mode = #tpu.pipeline_mode<synchronous>, transform_indices = @transform_7, window_bounds = array<i64: 1, 128>}, {pipeline_mode = #tpu.pipeline_mode<synchronous>, transform_indices = @transform_8, window_bounds = array<i64: 128, 128>}, {pipeline_mode = #tpu.pipeline_mode<synchronous>, transform_indices = @transform_9, window_bounds = array<i64: 1, 128>}, {transform_indices = @transform_10, window_bounds = array<i64: 16, 128>}]} {
    %c0_i32 = arith.constant 0 : i32
    %0 = arith.cmpi eq, %arg1, %c0_i32 : i32
    %1 = arith.extui %0 : i1 to i32
    %c0_i32_0 = arith.constant 0 : i32
    %2 = arith.cmpi ne, %1, %c0_i32_0 : i32
    scf.if %2 {
      %c0_8 = arith.constant 0 : index
      %c0_9 = arith.constant 0 : index
      %10 = vector.load %arg2[%c0_8, %c0_9] : memref<16x1xi32, #tpu.memory_space<vmem>>, vector<16x1xi32>
      %11 = tpu.iota {dimensions = array<i32: 1>} : vector<16x48xi32>
      %12 = vector.broadcast %10 : vector<16x1xi32> to vector<16x48xi32>
      %13 = arith.cmpi eq, %11, %12 : vector<16x48xi32>
      %14 = arith.extui %13 : vector<16x48xi1> to vector<16x48xi32>
      %15 = arith.sitofp %14 : vector<16x48xi32> to vector<16x48xf32>
      %16 = arith.truncf %15 : vector<16x48xf32> to vector<16x48xbf16>
      %c0_10 = arith.constant 0 : index
      %c0_11 = arith.constant 0 : index
      %17 = vector.load %arg3[%c0_10, %c0_11] : memref<48x128xbf16, #tpu.memory_space<vmem>>, vector<48x128xbf16>
      %cst_12 = arith.constant dense<0.000000e+00> : vector<16x128xf32>
      %18 = tpu.matmul %16, %17, %cst_12 {dimension_numbers = #tpu.dot_dimension_numbers<[1], [0], [0], [1], [0, 0, 1, 1], [], []>} : vector<16x48xbf16>, vector<48x128xbf16>, vector<16x128xf32> -> vector<16x128xf32>
      %19 = arith.truncf %18 : vector<16x128xf32> to vector<16x128xbf16>
      %c0_13 = arith.constant 0 : index
      %c0_14 = arith.constant 0 : index
      %20 = vector.load %arg4[%c0_13, %c0_14] : memref<128x128xbf16, #tpu.memory_space<vmem>>, vector<128x128xbf16>
      %cst_15 = arith.constant dense<0.000000e+00> : vector<16x128xf32>
      %21 = tpu.matmul %19, %20, %cst_15 {dimension_numbers = #tpu.dot_dimension_numbers<[1], [0], [0], [1], [0, 0, 1, 1], [], []>} : vector<16x128xbf16>, vector<128x128xbf16>, vector<16x128xf32> -> vector<16x128xf32>
      %c0_16 = arith.constant 0 : index
      %c0_17 = arith.constant 0 : index
      %22 = vector.load %arg5[%c0_16, %c0_17] : memref<1x128xf32, #tpu.memory_space<vmem>>, vector<1x128xf32>
      %23 = vector.broadcast %22 : vector<1x128xf32> to vector<16x128xf32>
      %24 = arith.addf %21, %23 : vector<16x128xf32>
      %cst_18 = arith.constant 0.000000e+00 : f32
      %25 = vector.broadcast %cst_18 : f32 to vector<16x128xf32>
      %26 = arith.maximumf %24, %25 : vector<16x128xf32>
      %27 = arith.truncf %26 : vector<16x128xf32> to vector<16x128xbf16>
      %c0_19 = arith.constant 0 : index
      %c0_20 = arith.constant 0 : index
      %28 = vector.load %arg6[%c0_19, %c0_20] : memref<128x128xbf16, #tpu.memory_space<vmem>>, vector<128x128xbf16>
      %cst_21 = arith.constant dense<0.000000e+00> : vector<16x128xf32>
      %29 = tpu.matmul %27, %28, %cst_21 {dimension_numbers = #tpu.dot_dimension_numbers<[1], [0], [0], [1], [0, 0, 1, 1], [], []>} : vector<16x128xbf16>, vector<128x128xbf16>, vector<16x128xf32> -> vector<16x128xf32>
      %c0_22 = arith.constant 0 : index
      %c0_23 = arith.constant 0 : index
      %30 = vector.load %arg7[%c0_22, %c0_23] : memref<1x128xf32, #tpu.memory_space<vmem>>, vector<1x128xf32>
      %31 = vector.broadcast %30 : vector<1x128xf32> to vector<16x128xf32>
      %32 = arith.addf %29, %31 : vector<16x128xf32>
      %cst_24 = arith.constant 0.000000e+00 : f32
      %33 = vector.broadcast %cst_24 : f32 to vector<16x128xf32>
      %34 = arith.maximumf %32, %33 : vector<16x128xf32>
      %35 = arith.truncf %34 : vector<16x128xf32> to vector<16x128xbf16>
      %c0_25 = arith.constant 0 : index
      %c0_26 = arith.constant 0 : index
      %36 = vector.load %arg8[%c0_25, %c0_26] : memref<128x128xbf16, #tpu.memory_space<vmem>>, vector<128x128xbf16>
      %cst_27 = arith.constant dense<0.000000e+00> : vector<16x128xf32>
      %37 = tpu.matmul %35, %36, %cst_27 {dimension_numbers = #tpu.dot_dimension_numbers<[1], [0], [0], [1], [0, 0, 1, 1], [], []>} : vector<16x128xbf16>, vector<128x128xbf16>, vector<16x128xf32> -> vector<16x128xf32>
      %c0_28 = arith.constant 0 : index
      %c0_29 = arith.constant 0 : index
      %38 = vector.load %arg9[%c0_28, %c0_29] : memref<1x128xf32, #tpu.memory_space<vmem>>, vector<1x128xf32>
      %39 = vector.broadcast %38 : vector<1x128xf32> to vector<16x128xf32>
      %40 = arith.addf %37, %39 : vector<16x128xf32>
      %cst_30 = arith.constant 0.000000e+00 : f32
      %41 = vector.broadcast %cst_30 : f32 to vector<16x128xf32>
      %42 = arith.maximumf %40, %41 : vector<16x128xf32>
      %43 = arith.truncf %42 : vector<16x128xf32> to vector<16x128xbf16>
      %c0_31 = arith.constant 0 : index
      %c0_32 = arith.constant 0 : index
      %44 = vector.load %arg13[%c0_31, %c0_32] : memref<16x128xbf16, #tpu.memory_space<vmem>>, vector<16x128xbf16>
      tpu.vector_store %arg13[%c0_31, %c0_32], %43 {strides = array<i32>} : memref<16x128xbf16, #tpu.memory_space<vmem>>, vector<16x128xbf16>,
    } else {
    }
    %c0 = arith.constant 0 : index
    %c0_1 = arith.constant 0 : index
    %3 = vector.load %arg13[%c0, %c0_1] : memref<16x128xbf16, #tpu.memory_space<vmem>>, vector<16x128xbf16>
    %c0_2 = arith.constant 0 : index
    %c0_3 = arith.constant 0 : index
    %4 = vector.load %arg10[%c0_2, %c0_3] : memref<128x128xbf16, #tpu.memory_space<vmem>>, vector<128x128xbf16>
    %cst = arith.constant dense<0.000000e+00> : vector<16x128xf32>
    %5 = tpu.matmul %3, %4, %cst {dimension_numbers = #tpu.dot_dimension_numbers<[1], [0], [0], [1], [0, 0, 1, 1], [], []>} : vector<16x128xbf16>, vector<128x128xbf16>, vector<16x128xf32> -> vector<16x128xf32>
    %c0_4 = arith.constant 0 : index
    %c0_5 = arith.constant 0 : index
    %6 = vector.load %arg11[%c0_4, %c0_5] : memref<1x128xf32, #tpu.memory_space<vmem>>, vector<1x128xf32>
    %7 = vector.broadcast %6 : vector<1x128xf32> to vector<16x128xf32>
    %8 = arith.addf %5, %7 : vector<16x128xf32>
    %c0_6 = arith.constant 0 : index
    %c0_7 = arith.constant 0 : index
    %9 = vector.load %arg12[%c0_6, %c0_7] : memref<16x128xf32, #tpu.memory_space<vmem>>, vector<16x128xf32>
    tpu.vector_store %arg12[%c0_6, %c0_7], %8 {strides = array<i32>} : memref<16x128xf32, #tpu.memory_space<vmem>>, vector<16x128xf32>,
    return
  }
  func.func @transform_0(%arg0: i32, %arg1: i32) -> (i32, i32) {
    %c0_i32 = arith.constant 0 : i32
    %c0_i32_0 = arith.constant 0 : i32
    return %arg0, %c0_i32 : i32, i32
  }
  func.func @transform_1(%arg0: i32, %arg1: i32) -> (i32, i32) {
    %c0_i32 = arith.constant 0 : i32
    %c0_i32_0 = arith.constant 0 : i32
    %c0_i32_1 = arith.constant 0 : i32
    return %c0_i32, %c0_i32_0 : i32, i32
  }
  func.func @transform_2(%arg0: i32, %arg1: i32) -> (i32, i32) {
    %c0_i32 = arith.constant 0 : i32
    %c0_i32_0 = arith.constant 0 : i32
    %c0_i32_1 = arith.constant 0 : i32
    return %c0_i32, %c0_i32_0 : i32, i32
  }
  func.func @transform_3(%arg0: i32, %arg1: i32) -> (i32, i32) {
    %c0_i32 = arith.constant 0 : i32
    %c0_i32_0 = arith.constant 0 : i32
    %c0_i32_1 = arith.constant 0 : i32
    return %c0_i32, %c0_i32_0 : i32, i32
  }
  func.func @transform_4(%arg0: i32, %arg1: i32) -> (i32, i32) {
    %c0_i32 = arith.constant 0 : i32
    %c0_i32_0 = arith.constant 0 : i32
    %c0_i32_1 = arith.constant 0 : i32
    return %c0_i32, %c0_i32_0 : i32, i32
  }
  func.func @transform_5(%arg0: i32, %arg1: i32) -> (i32, i32) {
    %c0_i32 = arith.constant 0 : i32
    %c0_i32_0 = arith.constant 0 : i32
    %c0_i32_1 = arith.constant 0 : i32
    return %c0_i32, %c0_i32_0 : i32, i32
  }
  func.func @transform_6(%arg0: i32, %arg1: i32) -> (i32, i32) {
    %c0_i32 = arith.constant 0 : i32
    %c0_i32_0 = arith.constant 0 : i32
    %c0_i32_1 = arith.constant 0 : i32
    return %c0_i32, %c0_i32_0 : i32, i32
  }
  func.func @transform_7(%arg0: i32, %arg1: i32) -> (i32, i32) {
    %c0_i32 = arith.constant 0 : i32
    %c0_i32_0 = arith.constant 0 : i32
    %c0_i32_1 = arith.constant 0 : i32
    return %c0_i32, %c0_i32_0 : i32, i32
  }
  func.func @transform_8(%arg0: i32, %arg1: i32) -> (i32, i32) {
    %c0_i32 = arith.constant 0 : i32
    %c0_i32_0 = arith.constant 0 : i32
    %c0_i32_1 = arith.constant 0 : i32
    return %c0_i32, %c0_i32_0 : i32, i32
  }
  func.func @transform_9(%arg0: i32, %arg1: i32) -> (i32, i32) {
    %c0_i32 = arith.constant 0 : i32
    %c0_i32_0 = arith.constant 0 : i32
    %c0_i32_1 = arith.constant 0 : i32
    return %c0_i32, %c0_i32_0 : i32, i32
  }
  func.func @transform_10(%arg0: i32, %arg1: i32) -> (i32, i32) {
    %c0_i32 = arith.constant 0 : i32
    return %arg0, %arg1 : i32, i32
  }
}

</mosaic_0001>

<bundles_post_ra>
// kernel: lfai_linear_forward.1
= control target key start
LH: loop header
LB: loop body
LE: loop exit
PB: predicated region body
PF: predicated region fallthrough
CT: control target
= control target key end

     0   :  { %15 = vsyncpa [#allocation4], 0  ;;  %s1179_s0 = inlined_call_operand.vmem [shape: s32[16,1], index: 0, kind: input, shape index: {}]   ;;  %s1180_s1 = inlined_call_operand.vmem [shape: bf16[48,128], index: 1, kind: input, shape index: {}]   ;;  %s1181_s2 = inlined_call_operand.hbm [shape: bf16[128,128], index: 2, kind: input, shape index: {}]   ;;  %s1182_s3 = inlined_call_operand.vmem [shape: f32[1,128], index: 3, kind: input, shape index: {}]   ;;  %s1183_s4 = inlined_call_operand.hbm [shape: bf16[128,128], index: 4, kind: input, shape index: {}]   ;;  %s1184_s5 = inlined_call_operand.vmem [shape: f32[1,128], index: 5, kind: input, shape index: {}]   ;;  %s1185_s6 = inlined_call_operand.hbm [shape: bf16[128,128], index: 6, kind: input, shape index: {}]   ;;  %s1186_s7 = inlined_call_operand.vmem [shape: f32[1,128], index: 7, kind: input, shape index: {}]   ;;  %s1187_s8 = inlined_call_operand.hbm [shape: bf16[128,128], index: 8, kind: input, shape index: {}]   ;;  %s1188_s9 = inlined_call_operand.vmem [shape: f32[1,128], index: 9, kind: input, shape index: {}]   ;;  %s1189_s10 = inlined_call_operand.vmem [shape: f32[16,128], index: 10, kind: output, shape index: {}]  }
   0x1   :  { %16 = vsyncpa [#allocation6], 0 }
   0x2   :  { %17 = vsyncpa [#allocation9], 0  ;;  %s961_s13 = smov [#allocation5]   ;;  %s962_s15 = smov [#allocation3]  }
   0x3   :  { %s41_s14 = sshll.u32 %s961_s13, 4  ;;  %s27_s16 = sshll.u32 %s962_s15, 4  ;;  %s42_s14 = int_to_ptr.vmem [resolvable:$true] %s41_s14  ;;  %s1025_s16 = int_to_ptr.vmem [resolvable:$true] %s27_s16 }
   0x4   :  { %s867_s19 = scalar_lea.hbm %s1183_s4, 1024 }
   0x5   :  { %p868_p0 = scmp.ne.s32.totalorder %s1183_s4, %s867_s19  ;;  %p871_p1 = scmp.lt.u32.totalorder %s867_s19, %s1183_s4 }
   0x7   :  { %p873_p2 = pnand %p871_p1, %p868_p0 }
   0x9   :  { %876 = shalt.err (!%p873_p2)
}
   0xa   :  { %s877_s24 = scalar_lea.vmem %s42_s14, 1024  ;;  %p882_p4 = scmp.lt.s32.totalorder %s42_s14, %s42_s14 }
   0xb   :  { %p878_p3 = scmp.ne.s32.totalorder %s42_s14, %s877_s24  ;;  %p883_p5 = scmp.lt.s32.totalorder %s877_s24, %s877_s24 }
   0xd   :  { %p884_p6 = por %p883_p5, %p882_p4 }
   0xf   :  { %p885_p7 = pnand %p884_p6, %p878_p3 }
  0x11   :  { %888 = shalt.err (!%p885_p7)
}
  0x12   :  { %s963_s25 = smov 64   ;;  %s964_s26 = smov 4  }
  0x13   :  { %47 = dma.hbm_to_vmem [thread:$0]  %s1183_s4, 1024, %s42_s14, [#allocation6], %s963_s25, %s963_s25, %s964_s26  }
  0x14   :  { %s889_s11 = scalar_lea.hbm %s1181_s2, 1024 }
  0x15   :  { %p890_p8 = scmp.ne.s32.totalorder %s1181_s2, %s889_s11  ;;  %p893_p9 = scmp.lt.u32.totalorder %s889_s11, %s1181_s2 }
  0x17   :  { %p895_p10 = pnand %p893_p9, %p890_p8 }
  0x19   :  { %898 = shalt.err (!%p895_p10)
}
  0x1a   :  { %s899_s18 = scalar_lea.vmem %s1025_s16, 1024  ;;  %p904_p12 = scmp.lt.s32.totalorder %s1025_s16, %s1025_s16 }
  0x1b   :  { %p900_p11 = scmp.ne.s32.totalorder %s1025_s16, %s899_s18  ;;  %p905_p13 = scmp.lt.s32.totalorder %s899_s18, %s899_s18 }
  0x1d   :  { %p906_p0 = por %p905_p13, %p904_p12 }
  0x1f   :  { %p907_p1 = pnand %p906_p0, %p900_p11 }
  0x21   :  { %910 = shalt.err (!%p907_p1)
}
  0x22   :  { %33 = dma.hbm_to_vmem [thread:$0]  %s1181_s2, 1024, %s1025_s16, [#allocation4], %s963_s25, %s963_s25, %s964_s26  }
  0x23   :  { %s965_s19 = smov [#allocation7]   ;;  %s966_s21 = smov [#allocation8]  }
  0x24   :  { %s55_s20 = sshll.u32 %s965_s19, 4  ;;  %s69_s22 = sshll.u32 %s966_s21, 4  ;;  %s56_s20 = int_to_ptr.vmem [resolvable:$true] %s55_s20  ;;  %s1062_s22 = int_to_ptr.vmem [resolvable:$true] %s69_s22 }
  0x25   :  { %s911_s27 = scalar_lea.hbm %s1185_s6, 1024 }
  0x26   :  { %p912_p2 = scmp.ne.s32.totalorder %s1185_s6, %s911_s27  ;;  %p915_p3 = scmp.lt.u32.totalorder %s911_s27, %s1185_s6 }
  0x28   :  { %p917_p4 = pnand %p915_p3, %p912_p2 }
  0x2a   :  { %920 = shalt.err (!%p917_p4)
}
  0x2b   :  { %s921_s2 = scalar_lea.vmem %s56_s20, 1024  ;;  %p926_p6 = scmp.lt.s32.totalorder %s56_s20, %s56_s20 }
  0x2c   :  { %p922_p5 = scmp.ne.s32.totalorder %s56_s20, %s921_s2  ;;  %p927_p7 = scmp.lt.s32.totalorder %s921_s2, %s921_s2 }
  0x2e   :  { %p928_p8 = por %p927_p7, %p926_p6 }
  0x30   :  { %p929_p9 = pnand %p928_p8, %p922_p5 }
  0x32   :  { %932 = shalt.err (!%p929_p9)
}
  0x33   :  { %61 = dma.hbm_to_vmem [thread:$0]  %s1185_s6, 1024, %s56_s20, [#allocation6], %s963_s25, %s963_s25, %s964_s26  }
  0x34   :  { %s933_s17 = scalar_lea.hbm %s1187_s8, 1024 }
  0x35   :  { %p934_p10 = scmp.ne.s32.totalorder %s1187_s8, %s933_s17  ;;  %p937_p11 = scmp.lt.u32.totalorder %s933_s17, %s1187_s8 }
  0x37   :  { %p939_p12 = pnand %p937_p11, %p934_p10 }
  0x39   :  { %942 = shalt.err (!%p939_p12)
}
  0x3a   :  { %s943_s21 = scalar_lea.vmem %s1062_s22, 1024  ;;  %p948_p0 = scmp.lt.s32.totalorder %s1062_s22, %s1062_s22 }
  0x3b   :  { %p944_p13 = scmp.ne.s32.totalorder %s1062_s22, %s943_s21  ;;  %p949_p1 = scmp.lt.s32.totalorder %s943_s21, %s943_s21 }
  0x3d   :  { %p950_p2 = por %p949_p1, %p948_p0 }
  0x3f   :  { %p951_p3 = pnand %p950_p2, %p944_p13 }
  0x41   :  { %954 = shalt.err (!%p951_p3)
}
  0x42   :  { %75 = dma.hbm_to_vmem [thread:$0]  %s1187_s8, 1024, %s1062_s22, [#allocation9], %s963_s25, %s963_s25, %s964_s26  }
  0x43   :  { %955 = dma.done.wait [#allocation4], 1024  }
  0x44   :  { %956 = vsyncadd [#allocation4], 4294966272 }
  0x45   :  { %957 = dma.done.wait [#allocation6], 2048  }
  0x46   :  { %958 = vsyncadd [#allocation6], 4294965248 }
  0x47   :  { %959 = dma.done.wait [#allocation9], 1024  }
  0x48   :  { %960 = vsyncadd [#allocation9], 4294966272  ;;  %v967_v0 = vmov 0   ;;  %v968_v1 = vmov 0.0   ;;  %v95_v2 = vld [vmem:[%s1179_s0] sm:$0xff]  ;;  %v96_v3 = vld [vmem:[%s1179_s0 + $0x8] sm:$0xff]  ;;  %v97_v14 = vlaneseq }
  0x49   :  { %831 = vset.pattern.permute.xlu0 %v967_v0  ;;  %732 = vmatprep.subr.bf16.mxu0 %v968_v1  ;;  %v832_v4 = vld [vmem:[%s1180_s1] sm:$0xff]   ;;  %v833_v5 = vld [vmem:[%s1180_s1 + $0x8] sm:$0xff]   ;;  %v834_v6 = vld [vmem:[%s1180_s1 + $0x10] sm:$0xff]   ;;  %vm969_vm0 = vmmov 0   ;;  %vm136_vm3 = vcmask 392192  }
  0x4a   :  { %742 = vmatprep.subr.bf16.mxu1 %v968_v1  ;;  %100 = vperm.xlu0 %831, %v95_v2   ;;  %v835_v7 = vld [vmem:[#allocation3] sm:$0xff]   ;;  %v836_v8 = vld [vmem:[#allocation3 + $0x8] sm:$0xff]   ;;  %v837_v9 = vld [vmem:[#allocation3 + $0x10] sm:$0xff]   ;;  %v98_v15 = vand.u32 127, %v97_v14 }
  0x4b   :  { %733 = vmatpush3.bf16.msra.mxu0 %v832_v4  ;;  %738 = vmatprep.mubr.msk.bf16.mxu0 %vm969_vm0, %v968_v1  ;;  %v838_v10 = vld [vmem:[#allocation3 + $0x18] sm:$0xff]   ;;  %v839_v11 = vld [vmem:[#allocation3 + $0x20] sm:$0xff]   ;;  %v840_v12 = vld [vmem:[#allocation3 + $0x28] sm:$0xff]  }
  0x4c   :  { %734 = vmatprep.subr.bf16.mxu0 %v968_v1  ;;  %758 = vmatprep.mubr.msk.bf16.mxu1 %vm969_vm0, %v968_v1  ;;  %v841_v13 = vld [vmem:[#allocation3 + $0x30] sm:$0xff]   ;;  %v842_v21 = vld [vmem:[#allocation3 + $0x38] sm:$0xff]   ;;  %v843_v22 = vld [vmem:[#allocation5] sm:$0xff]  }
  0x4d   :  { %743 = vmatpush3.bf16.msra.mxu1 %v835_v7  ;;  %v844_v23 = vld [vmem:[#allocation5 + $0x8] sm:$0xff]   ;;  %v845_v24 = vld [vmem:[#allocation5 + $0x10] sm:$0xff]   ;;  %v846_v25 = vld [vmem:[#allocation5 + $0x18] sm:$0xff]  }
  0x4e   :  { %103 = vperm.xlu0 %831, %v96_v3   ;;  %744 = vmatprep.subr.bf16.mxu1 %v968_v1  ;;  %v847_v26 = vld [vmem:[#allocation5 + $0x20] sm:$0xff]   ;;  %v848_v27 = vld [vmem:[#allocation5 + $0x28] sm:$0xff]   ;;  %v849_v33 = vld [vmem:[#allocation5 + $0x30] sm:$0xff]  }
  0x4f   :  { %735 = vmatpush3.bf16.msra.mxu0 %v833_v5  ;;  %v850_v34 = vld [vmem:[#allocation5 + $0x38] sm:$0xff]   ;;  %v851_v35 = vld [vmem:[#allocation7] sm:$0xff]   ;;  %v852_v36 = vld [vmem:[#allocation7 + $0x8] sm:$0xff]  }
  0x50   :  { %736 = vmatprep.subr.bf16.mxu0 %v968_v1  ;;  %v853_v37 = vld [vmem:[#allocation7 + $0x10] sm:$0xff]   ;;  %v854_v38 = vld [vmem:[#allocation7 + $0x18] sm:$0xff]   ;;  %v855_v39 = vld [vmem:[#allocation7 + $0x20] sm:$0xff]  }
  0x51   :  { %745 = vmatpush3.bf16.msra.mxu1 %v836_v8  ;;  %v856_v40 = vld [vmem:[#allocation7 + $0x28] sm:$0xff]   ;;  %v857_v51 = vld [vmem:[#allocation7 + $0x30] sm:$0xff]   ;;  %v858_v52 = vld [vmem:[#allocation7 + $0x38] sm:$0xff]  }
  0x52   :  { %746 = vmatprep.subr.bf16.mxu1 %v968_v1  ;;  %v656_v41 = vld [vmem:[%s1182_s3] ss:$0 sm:$0xff]  ;;  %v859_v53 = vld [vmem:[#allocation8] sm:$0xff]   ;;  %v861_v55 = vld [vmem:[#allocation8 + $0x10] sm:$0xff]  }
  0x53   :  { %737 = vmatpush3.bf16.msra.mxu0 %v834_v6  ;;  %v860_v54 = vld [vmem:[#allocation8 + $0x8] sm:$0xff]   ;;  %v862_v56 = vld [vmem:[#allocation8 + $0x18] sm:$0xff]   ;;  %v863_v57 = vld [vmem:[#allocation8 + $0x20] sm:$0xff]  }
  0x54   :  { %762 = vmatprep.subr.bf16.mxu0 %v968_v1  ;;  %v864_v58 = vld [vmem:[#allocation8 + $0x28] sm:$0xff]   ;;  %v865_v6 = vld [vmem:[#allocation8 + $0x30] sm:$0xff]   ;;  %v866_v7 = vld [vmem:[#allocation8 + $0x38] sm:$0xff]  }
  0x55   :  { %747 = vmatpush3.bf16.msra.mxu1 %v837_v9  ;;  %v665_v59 = vld [vmem:[%s1184_s5] ss:$0 sm:$0xff] }
  0x56   :  { %748 = vmatprep.subr.bf16.mxu1 %v968_v1  ;;  %v674_v8 = vld [vmem:[%s1186_s7] ss:$0 sm:$0xff] }
  0x59   :  { %749 = vmatpush3.bf16.msra.mxu1 %v838_v10 }
  0x5a   :  { %750 = vmatprep.subr.bf16.mxu1 %v968_v1 }
  0x5d   :  { %751 = vmatpush3.bf16.msra.mxu1 %v839_v11 }
  0x5e   :  { %752 = vmatprep.subr.bf16.mxu1 %v968_v1 }
  0x61   :  { %753 = vmatpush3.bf16.msra.mxu1 %v840_v12 }
  0x62   :  { %754 = vmatprep.subr.bf16.mxu1 %v968_v1 }
  0x65   :  { %755 = vmatpush3.bf16.msra.mxu1 %v841_v13 }
  0x66   :  { %756 = vmatprep.subr.bf16.mxu1 %v968_v1 }
  0x69   :  { %757 = vmatpush3.bf16.msra.mxu1 %v842_v21 }
  0x6a   :  { %782 = vmatprep.subr.bf16.mxu1 %v968_v1 }
  0xc9   :  { %v101_v16 = vpop.permute.xlu0 %100 }
  0xca   :  { %vm105_vm1 = vcmp.eq.s32.totalorder %v98_v15, %v101_v16 }
  0xcb   :  { %v650_v18 = vsel %vm105_vm1, 1.0, %v968_v1 }
  0xcd   :  { %v104_v17 = vpop.permute.xlu0 %103 }
  0xce   :  { %vm106_vm2 = vcmp.eq.s32.totalorder %v98_v15, %v104_v17 }
  0xcf   :  { %v651_v19 = vsel %vm106_vm2, 1.0, %v968_v1 }
  0xd0   :  { %v111_v20 = vpack.c.bf16 %v651_v19, %v650_v18 }
  0xd2   :  { %739 = vmatmul.mubr.msk.bf16.vlgmr.msra.gmra.mrb[0].mxu0 %vm136_vm3, %v111_v20 }
  0xd3   :  { %778 = vmatprep.mubr.msk.bf16.mxu0 %vm969_vm0, %v968_v1  ;;  %763 = vmatpush3.bf16.msra.mxu0 %v843_v22 }
  0xd4   :  { %764 = vmatprep.subr.bf16.mxu0 %v968_v1 }
  0xd7   :  { %765 = vmatpush3.bf16.msra.mxu0 %v844_v23 }
  0xd8   :  { %766 = vmatprep.subr.bf16.mxu0 %v968_v1 }
  0xdb   :  { %767 = vmatpush3.bf16.msra.mxu0 %v845_v24 }
  0xdc   :  { %768 = vmatprep.subr.bf16.mxu0 %v968_v1 }
  0xdf   :  { %769 = vmatpush3.bf16.msra.mxu0 %v846_v25 }
  0xe0   :  { %770 = vmatprep.subr.bf16.mxu0 %v968_v1 }
  0xe3   :  { %771 = vmatpush3.bf16.msra.mxu0 %v847_v26 }
  0xe4   :  { %772 = vmatprep.subr.bf16.mxu0 %v968_v1 }
  0xe7   :  { %773 = vmatpush3.bf16.msra.mxu0 %v848_v27 }
  0xe8   :  { %774 = vmatprep.subr.bf16.mxu0 %v968_v1 }
  0xeb   :  { %775 = vmatpush3.bf16.msra.mxu0 %v849_v33 }
  0xec   :  { %776 = vmatprep.subr.bf16.mxu0 %v968_v1 }
  0xef   :  { %777 = vmatpush3.bf16.msra.mxu0 %v850_v34 }
  0xf0   :  { %802 = vmatprep.subr.bf16.mxu0 %v968_v1 }
 0x1a5   :  { %v174_v28 = vpop.f32.mrb[0].mxu0 }
 0x1a6   :  { %v740_v29 = vpop.f32.mrb[1].mxu0 }
 0x1a7   :  { %v177_v30 = vpop.f32.mrb[2].mxu0 }
 0x1a8   :  { %v181_v31 = vpack.c.bf16 %v177_v30, %v174_v28  ;;  %v741_v32 = vpop.f32.mrb[3].mxu0 }
 0x1aa   :  { %759 = vmatmul.mubr.bf16.vlgmr.msra.gmra.mrb[0].mxu1 %v181_v31 }
 0x1ab   :  { %798 = vmatprep.mubr.msk.bf16.mxu1 %vm969_vm0, %v968_v1  ;;  %783 = vmatpush3.bf16.msra.mxu1 %v851_v35 }
 0x1ac   :  { %784 = vmatprep.subr.bf16.mxu1 %v968_v1 }
 0x1af   :  { %785 = vmatpush3.bf16.msra.mxu1 %v852_v36 }
 0x1b0   :  { %786 = vmatprep.subr.bf16.mxu1 %v968_v1 }
 0x1b3   :  { %787 = vmatpush3.bf16.msra.mxu1 %v853_v37 }
 0x1b4   :  { %788 = vmatprep.subr.bf16.mxu1 %v968_v1 }
 0x1b7   :  { %789 = vmatpush3.bf16.msra.mxu1 %v854_v38 }
 0x1b8   :  { %790 = vmatprep.subr.bf16.mxu1 %v968_v1 }
 0x1bb   :  { %791 = vmatpush3.bf16.msra.mxu1 %v855_v39 }
 0x1bc   :  { %792 = vmatprep.subr.bf16.mxu1 %v968_v1 }
 0x1bf   :  { %793 = vmatpush3.bf16.msra.mxu1 %v856_v40 }
 0x1c0   :  { %794 = vmatprep.subr.bf16.mxu1 %v968_v1 }
 0x1c3   :  { %795 = vmatpush3.bf16.msra.mxu1 %v857_v51 }
 0x1c4   :  { %796 = vmatprep.subr.bf16.mxu1 %v968_v1 }
 0x1c7   :  { %797 = vmatpush3.bf16.msra.mxu1 %v858_v52 }
 0x27d   :  { %v287_v42 = vpop.f32.mrb[0].mxu1 }
 0x27e   :  { %v288_v43 = vadd.f32 %v656_v41, %v287_v42  ;;  %v760_v44 = vpop.f32.mrb[1].mxu1 }
 0x27f   :  { %v290_v45 = vpop.f32.mrb[2].mxu1 }
 0x280   :  { %v291_v46 = vadd.f32 %v656_v41, %v290_v45  ;;  %v761_v47 = vpop.f32.mrb[3].mxu1  ;;  %v294_v48 = vmax.f32 %v288_v43, 0.0 }
 0x282   :  { %v295_v49 = vmax.f32 %v291_v46, 0.0 }
 0x284   :  { %v296_v50 = vpack.c.bf16 %v295_v49, %v294_v48 }
 0x286   :  { %779 = vmatmul.mubr.bf16.vlgmr.msra.gmra.mrb[4].mxu0 %v296_v50 }
 0x287   :  { %818 = vmatprep.mubr.msk.bf16.mxu0 %vm969_vm0, %v968_v1  ;;  %803 = vmatpush3.bf16.msra.mxu0 %v859_v53 }
 0x288   :  { %804 = vmatprep.subr.bf16.mxu0 %v968_v1 }
 0x28b   :  { %805 = vmatpush3.bf16.msra.mxu0 %v860_v54 }
 0x28c   :  { %806 = vmatprep.subr.bf16.mxu0 %v968_v1 }
 0x28f   :  { %807 = vmatpush3.bf16.msra.mxu0 %v861_v55 }
 0x290   :  { %808 = vmatprep.subr.bf16.mxu0 %v968_v1 }
 0x293   :  { %809 = vmatpush3.bf16.msra.mxu0 %v862_v56 }
 0x294   :  { %810 = vmatprep.subr.bf16.mxu0 %v968_v1 }
 0x297   :  { %811 = vmatpush3.bf16.msra.mxu0 %v863_v57 }
 0x298   :  { %812 = vmatprep.subr.bf16.mxu0 %v968_v1 }
 0x29b   :  { %813 = vmatpush3.bf16.msra.mxu0 %v864_v58 }
 0x29c   :  { %814 = vmatprep.subr.bf16.mxu0 %v968_v1 }
 0x29f   :  { %815 = vmatpush3.bf16.msra.mxu0 %v865_v6 }
 0x2a0   :  { %816 = vmatprep.subr.bf16.mxu0 %v968_v1  ;;  %v683_v1 = vld [vmem:[%s1188_s9] ss:$0 sm:$0xff] }
 0x2a3   :  { %817 = vmatpush3.bf16.msra.mxu0 %v866_v7 }
 0x359   :  { %v402_v60 = vpop.f32.mrb[4].mxu0 }
 0x35a   :  { %v403_v61 = vadd.f32 %v665_v59, %v402_v60  ;;  %v780_v62 = vpop.f32.mrb[5].mxu0 }
 0x35b   :  { %v405_v63 = vpop.f32.mrb[6].mxu0 }
 0x35c   :  { %v406_v0 = vadd.f32 %v665_v59, %v405_v63  ;;  %v781_v2 = vpop.f32.mrb[7].mxu0  ;;  %v409_v3 = vmax.f32 %v403_v61, 0.0 }
 0x35e   :  { %v410_v4 = vmax.f32 %v406_v0, 0.0 }
 0x360   :  { %v411_v5 = vpack.c.bf16 %v410_v4, %v409_v3 }
 0x362   :  { %799 = vmatmul.mubr.bf16.vlgmr.msra.gmra.mrb[4].mxu1 %v411_v5 }
 0x435   :  { %v517_v9 = vpop.f32.mrb[4].mxu1 }
 0x436   :  { %v518_v10 = vadd.f32 %v674_v8, %v517_v9  ;;  %v800_v11 = vpop.f32.mrb[5].mxu1 }
 0x437   :  { %v520_v12 = vpop.f32.mrb[6].mxu1 }
 0x438   :  { %v521_v13 = vadd.f32 %v674_v8, %v520_v12  ;;  %v801_v14 = vpop.f32.mrb[7].mxu1  ;;  %v524_v15 = vmax.f32 %v518_v10, 0.0 }
 0x43a   :  { %v525_v16 = vmax.f32 %v521_v13, 0.0 }
 0x43c   :  { %v526_v17 = vpack.c.bf16 %v525_v16, %v524_v15 }
 0x43e   :  { %819 = vmatmul.mubr.bf16.vlgmr.msra.gmra.mrb[8].mxu0 %v526_v17 }
 0x511   :  { %v634_v18 = vpop.f32.mrb[8].mxu0 }
 0x512   :  { %v635_v19 = vadd.f32 %v683_v1, %v634_v18  ;;  %v820_v20 = vpop.f32.mrb[9].mxu0 }
 0x513   :  { %v637_v21 = vpop.f32.mrb[10].mxu0 }
 0x514   :  { %641 = vst [vmem:[%s1189_s10] sm:$0xff] %v635_v19  ;;  %v638_v22 = vadd.f32 %v683_v1, %v637_v21  ;;  %v821_v23 = vpop.f32.mrb[11].mxu0 }
 0x516   :  { %642 = vst [vmem:[%s1189_s10 + $0x8] sm:$0xff] %v638_v22 }
 0x517   :  { %647 = vsyncpa [#allocation4], 1 }
 0x518   :  { %648 = vsyncpa [#allocation6], 1 }
 0x519   :  { %649 = vsyncpa [#allocation9], 1 }

</bundles_post_ra>
